<compile_context>
chip_gen: v6e
topology: v6e:2x2x1
jax: 0.10.0
libtpu: 0.0.40
codegen_flags: <defaults>
</compile_context>

<pallas_src>
import functools

import jax
import jax.numpy as jnp
from jax.experimental import pallas as pl
from jax.experimental.pallas import tpu as pltpu


def _nll_smooth_kernel(x_ref, t_ref, loss_ref, *, confidence, smoothing, inv_c):
    # x_ref, t_ref: (TB, C) block in VMEM; loss_ref: (TB, 1) per-row loss.
    x = x_ref[...].astype(jnp.float32)          # x = x.float()
    t = t_ref[...].astype(jnp.float32)          # target = target.float()

    # Numerically stable log-sum-exp pieces; logprobs = shifted - lse, but we
    # never materialize it.
    m = jnp.max(x, axis=-1, keepdims=True)                       # (TB, 1)
    shifted = x - m                                              # (TB, C)
    lse = jnp.log(jnp.sum(jnp.exp(shifted), axis=-1, keepdims=True))  # (TB, 1)

    sum_t = jnp.sum(t, axis=-1, keepdims=True)                   # (TB, 1)
    sum_st = jnp.sum(shifted * t, axis=-1, keepdims=True)        # (TB, 1)
    sum_s = jnp.sum(shifted, axis=-1, keepdims=True)             # (TB, 1)

    nll_loss = lse * sum_t - sum_st          # = sum(-logprobs * t, -1)
    smooth_loss = lse - sum_s * inv_c        # = -mean(logprobs, -1)

    loss_ref[...] = confidence * nll_loss + smoothing * smooth_loss


def _vmem_capacity_bytes():
    try:
        cap = int(pltpu.get_tpu_info().vmem_capacity_bytes)
        if cap > 0:
            return cap
    except Exception:
        pass
    return 64 * 1024 * 1024   # conservative fallback: v7x physical VMEM


def _round_up(v, m):
    return ((v + m - 1) // m) * m


def _choose_block_rows(n, c, in_itemsize_sum, capacity):
    """Pick the largest row tile that fits a ~55% VMEM budget."""
    budget = int(capacity * 0.55)
    # Per-row VMEM cost: both inputs double-buffered by the pipeline
    # (2 buffers x itemsize) plus headroom for ~4 f32 (rows, C) temporaries
    # (x/t upcasts, exp) while the body runs.
    per_row = c * (2 * in_itemsize_sum + 4 * 4)
    max_rows = max(8, budget // per_row)
    if max_rows >= n:
        if n <= 1024:
            return n                              # tiny: one block, 1-step grid
        return _round_up((n + 1) // 2, 8)         # >=2 balanced steps (megacore)
    return max(8, (max_rows // 8) * 8)


def nll_multilabel_smooth(x, target, smoothing=0.1, block_rows=None):
    """Training-mode forward of NLLMultiLabelSmooth. Returns a scalar."""
    # TODO(synk): eval-mode branch (F.cross_entropy with int class targets) is
    # not implemented; only the training-mode multi-label-smooth path is.
    assert x.shape == target.shape and x.ndim == 2
    N, C = x.shape
    confidence = 1.0 - smoothing

    capacity = _vmem_capacity_bytes()
    if block_rows is None:
        block_rows = _choose_block_rows(
            N, C, x.dtype.itemsize + target.dtype.itemsize, capacity)
    block_rows = int(block_rows)

    if block_rows >= N:
        block_rows = N
        n_pad = N
    else:
        block_rows = max(8, (block_rows // 8) * 8)
        n_pad = int(pl.cdiv(N, block_rows)) * block_rows
        if n_pad != N:
            x = jnp.pad(x, ((0, n_pad - N), (0, 0)))
            target = jnp.pad(target, ((0, n_pad - N), (0, 0)))
    grid = (n_pad // block_rows,)

    kernel = functools.partial(
        _nll_smooth_kernel,
        confidence=confidence,
        smoothing=smoothing,
        inv_c=1.0 / C,
    )

    per_row_loss = pl.pallas_call(
        kernel,
        out_shape=jax.ShapeDtypeStruct((n_pad, 1), jnp.float32),
        grid_spec=pltpu.PrefetchScalarGridSpec(
            num_scalar_prefetch=0,
            grid=grid,
            in_specs=[
                pl.BlockSpec((block_rows, C), lambda i: (i, 0)),
                pl.BlockSpec((block_rows, C), lambda i: (i, 0)),
            ],
            out_specs=pl.BlockSpec((block_rows, 1), lambda i: (i, 0)),
        ),
        compiler_params=pltpu.CompilerParams(
            dimension_semantics=("parallel",),
            vmem_limit_bytes=int(capacity * 0.9),
        ),
    )(x, target)

    # Drop padded rows, then batch mean (loss.mean()).
    return jnp.mean(per_row_loss[:N, 0])


def _reference(x, target, smoothing=0.1):
    x = x.astype(jnp.float32)
    target = target.astype(jnp.float32)
    logprobs = jax.nn.log_softmax(x, axis=-1)
    nll = jnp.sum(-logprobs * target, axis=-1)
    smooth = -jnp.mean(logprobs, axis=-1)
    loss = (1.0 - smoothing) * nll + smoothing * smooth
    return jnp.mean(loss)


if __name__ == "__main__":
    key = jax.random.PRNGKey(0)
    k1, k2, k3 = jax.random.split(key, 3)

    smoothing = 0.1

    # Case 1: tiny single-block path (batch=16, classes=32), f32 logits,
    # mixup-style soft multi-label targets (rows sum to 1).
    N, C = 16, 32
    x = jax.random.normal(k1, (N, C), dtype=jnp.float32)
    labels_a = jax.random.randint(k2, (N,), 0, C)
    labels_b = jax.random.randint(jax.random.fold_in(k2, 1), (N,), 0, C)
    lam = 0.7
    target = (
        lam * jax.nn.one_hot(labels_a, C)
        + (1.0 - lam) * jax.nn.one_hot(labels_b, C)
    ).astype(jnp.float32)

    loss = jax.block_until_ready(nll_multilabel_smooth(x, target, smoothing))
    ref = _reference(x, target, smoothing)
    assert jnp.allclose(loss, ref, atol=1e-4, rtol=1e-4), (loss, ref)

    # Case 2: multi-block path with ragged batch (padding) and bf16 inputs
    # (native bf16 DMA, f32 compute in-kernel).
    N2, C2 = 300, 256
    x2 = jax.random.normal(k3, (N2, C2), dtype=jnp.float32).astype(jnp.bfloat16)
    labels2 = jax.random.randint(jax.random.fold_in(k3, 1), (N2,), 0, C2)
    target2 = jax.nn.one_hot(labels2, C2).astype(jnp.bfloat16)

    loss2 = jax.block_until_ready(
        nll_multilabel_smooth(x2, target2, smoothing, block_rows=128))
    ref2 = _reference(x2, target2, smoothing)
    assert jnp.allclose(loss2, ref2, atol=1e-3, rtol=1e-3), (loss2, ref2)

    print("KERNEL_OK")
</pallas_src>

<mosaic_0001>
module attributes {stable_mosaic.version = 11 : i64} {
  func.func @_nll_smooth_kernel(%arg0: i32, %arg1: memref<16x32xf32, #tpu.memory_space<vmem>>, %arg2: memref<16x32xf32, #tpu.memory_space<vmem>>, %arg3: memref<16x1xf32, #tpu.memory_space<vmem>>) attributes {dimension_semantics = [#tpu.dimension_semantics<parallel>], iteration_bounds = array<i64: 1>, scalar_prefetch = 0 : i64, scratch_operands = 0 : i64, tpu.core_type = #tpu.core_type<tc>, window_params = [{transform_indices = @transform_0, window_bounds = array<i64: 16, 32>}, {transform_indices = @transform_1, window_bounds = array<i64: 16, 32>}, {transform_indices = @transform_2, window_bounds = array<i64: 16, 1>}]} {
    %c0 = arith.constant 0 : index
    %c0_0 = arith.constant 0 : index
    %0 = vector.load %arg1[%c0, %c0_0] : memref<16x32xf32, #tpu.memory_space<vmem>>, vector<16x32xf32>
    %c0_1 = arith.constant 0 : index
    %c0_2 = arith.constant 0 : index
    %1 = vector.load %arg2[%c0_1, %c0_2] : memref<16x32xf32, #tpu.memory_space<vmem>>, vector<16x32xf32>
    %cst = arith.constant dense<0xFF800000> : vector<16xf32>
    %2 = vector.multi_reduction <maximumf>, %0, %cst [1] : vector<16x32xf32> to vector<16xf32>
    %3 = vector.shape_cast %2 : vector<16xf32> to vector<16x1xf32>
    %4 = vector.broadcast %3 : vector<16x1xf32> to vector<16x32xf32>
    %5 = arith.subf %0, %4 : vector<16x32xf32>
    %6 = math.exp %5 : vector<16x32xf32>
    %cst_3 = arith.constant dense<0.000000e+00> : vector<16xf32>
    %7 = vector.multi_reduction <add>, %6, %cst_3 [1] : vector<16x32xf32> to vector<16xf32>
    %8 = vector.shape_cast %7 : vector<16xf32> to vector<16x1xf32>
    %9 = math.log %8 : vector<16x1xf32>
    %cst_4 = arith.constant dense<0.000000e+00> : vector<16xf32>
    %10 = vector.multi_reduction <add>, %1, %cst_4 [1] : vector<16x32xf32> to vector<16xf32>
    %11 = vector.shape_cast %10 : vector<16xf32> to vector<16x1xf32>
    %12 = arith.mulf %5, %1 : vector<16x32xf32>
    %cst_5 = arith.constant dense<0.000000e+00> : vector<16xf32>
    %13 = vector.multi_reduction <add>, %12, %cst_5 [1] : vector<16x32xf32> to vector<16xf32>
    %14 = vector.shape_cast %13 : vector<16xf32> to vector<16x1xf32>
    %cst_6 = arith.constant dense<0.000000e+00> : vector<16xf32>
    %15 = vector.multi_reduction <add>, %5, %cst_6 [1] : vector<16x32xf32> to vector<16xf32>
    %16 = vector.shape_cast %15 : vector<16xf32> to vector<16x1xf32>
    %17 = arith.mulf %9, %11 : vector<16x1xf32>
    %18 = arith.subf %17, %14 : vector<16x1xf32>
    %cst_7 = arith.constant 3.125000e-02 : f32
    %19 = vector.broadcast %cst_7 : f32 to vector<16x1xf32>
    %20 = arith.mulf %16, %19 : vector<16x1xf32>
    %21 = arith.subf %9, %20 : vector<16x1xf32>
    %cst_8 = arith.constant 0.899999976 : f32
    %22 = vector.broadcast %cst_8 : f32 to vector<16x1xf32>
    %23 = arith.mulf %22, %18 : vector<16x1xf32>
    %cst_9 = arith.constant 1.000000e-01 : f32
    %24 = vector.broadcast %cst_9 : f32 to vector<16x1xf32>
    %25 = arith.mulf %24, %21 : vector<16x1xf32>
    %26 = arith.addf %23, %25 : vector<16x1xf32>
    %c0_10 = arith.constant 0 : index
    %c0_11 = arith.constant 0 : index
    %27 = vector.load %arg3[%c0_10, %c0_11] : memref<16x1xf32, #tpu.memory_space<vmem>>, vector<16x1xf32>
    tpu.vector_store %arg3[%c0_10, %c0_11], %26 {strides = array<i32>} : memref<16x1xf32, #tpu.memory_space<vmem>>, vector<16x1xf32>,
    return
  }
  func.func @transform_0(%arg0: i32) -> (i32, i32) {
    %c0_i32 = arith.constant 0 : i32
    %c0_i32_0 = arith.constant 0 : i32
    return %arg0, %c0_i32 : i32, i32
  }
  func.func @transform_1(%arg0: i32) -> (i32, i32) {
    %c0_i32 = arith.constant 0 : i32
    %c0_i32_0 = arith.constant 0 : i32
    return %arg0, %c0_i32 : i32, i32
  }
  func.func @transform_2(%arg0: i32) -> (i32, i32) {
    %c0_i32 = arith.constant 0 : i32
    %c0_i32_0 = arith.constant 0 : i32
    return %arg0, %c0_i32 : i32, i32
  }
}

</mosaic_0001>

<bundles_post_ra>
// kernel: tpu_custom_call.1
= control target key start
LH: loop header
LB: loop body
LE: loop exit
PB: predicated region body
PF: predicated region fallthrough
CT: control target
= control target key end

     0   :  { %7 = vsyncpa [#allocation3], 0  ;;  %s206_s0 = inlined_call_operand.hbm [shape: f32[16,32], index: 0, kind: input, shape index: {}]   ;;  %s207_s1 = inlined_call_operand.hbm [shape: f32[16,32], index: 1, kind: input, shape index: {}]   ;;  %s208_s2 = inlined_call_operand.vmem [shape: f32[16,1], index: 2, kind: output, shape index: {}]  }
   0x1   :  { %8 = vsyncpa [#allocation5], 0  ;;  %s165_s9 = smov [#allocation2]  }
   0x2   :  { %s14_s10 = sshll.u32 %s165_s9, 4  ;;  %s15_s10 = int_to_ptr.vmem [resolvable:$true] %s14_s10 }
   0x3   :  { %s129_s11 = scalar_lea.vmem %s15_s10, 256  ;;  %p134_p1 = scmp.lt.s32.totalorder %s15_s10, %s15_s10 }
   0x4   :  { %p130_p0 = scmp.ne.s32.totalorder %s15_s10, %s129_s11  ;;  %p135_p2 = scmp.lt.s32.totalorder %s129_s11, %s129_s11 }
   0x6   :  { %p136_p3 = por %p135_p2, %p134_p1 }
   0x8   :  { %p137_p4 = pnand %p136_p3, %p130_p0 }
   0xa   :  { %140 = shalt.err (!%p137_p4)
}
   0xb   :  { %s166_s12 = smov 128   ;;  %s167_s13 = smov 8  }
   0xc   :  { %20 = dma.hbm_to_vmem [thread:$0]  %s206_s0, 256, %s15_s10, [#allocation3], %s166_s12, %s166_s12, %s167_s13  }
   0xd   :  { %s168_s16 = smov [#allocation4]  }
   0xe   :  { %s26_s17 = sshll.u32 %s168_s16, 4  ;;  %s27_s17 = int_to_ptr.vmem [resolvable:$true] %s26_s17 }
   0xf   :  { %s149_s18 = scalar_lea.vmem %s27_s17, 256  ;;  %p154_p6 = scmp.lt.s32.totalorder %s27_s17, %s27_s17 }
  0x10   :  { %p150_p5 = scmp.ne.s32.totalorder %s27_s17, %s149_s18  ;;  %p155_p7 = scmp.lt.s32.totalorder %s149_s18, %s149_s18 }
  0x12   :  { %p156_p8 = por %p155_p7, %p154_p6 }
  0x14   :  { %p157_p9 = pnand %p156_p8, %p150_p5 }
  0x16   :  { %160 = shalt.err (!%p157_p9)
}
  0x17   :  { %32 = dma.hbm_to_vmem [thread:$0]  %s207_s1, 256, %s27_s17, [#allocation5], %s166_s12, %s166_s12, %s167_s13  }
  0x18   :  { %161 = dma.done.wait [#allocation3], 256  }
  0x19   :  { %162 = vsyncadd [#allocation3], 4294967040 }
  0x1a   :  { %163 = dma.done.wait [#allocation5], 256  }
  0x1b   :  { %164 = vsyncadd [#allocation5], 4294967040  ;;  %vm43_vm0 = vcmask 261120   ;;  %v39_v0 = vld [vmem:[#allocation2] sm:$0xff]  ;;  %v40_v1 = vld [vmem:[#allocation2 + $0x8] sm:$0xff]  ;;  %vm100_vm1 = vcmask 7168  }
  0x1c   :  { %v44_v2 = vsel %vm43_vm0, %v39_v0, -inf  ;;  %v47_v3 = vsel %vm43_vm0, %v40_v1, -inf  ;;  %v41_v4 = vld [vmem:[#allocation4] sm:$0xff]  ;;  %v42_v19 = vld [vmem:[#allocation4 + $0x8] sm:$0xff] }
  0x1d   :  { %45 = vmax.xlane.f32.xlu0 %v44_v2  ;;  %v66_v5 = vsel %vm43_vm0, %v41_v4, 0.0  ;;  %v69_v20 = vsel %vm43_vm0, %v42_v19, 0.0 }
  0x21   :  { %48 = vmax.xlane.f32.xlu0 %v47_v3 }
  0x25   :  { %67 = vadd.xlane.f32.xlu0 %v66_v5 }
  0xa6   :  { %v46_v6 = vpop.xlane.xlu0 %45 }
  0xa7   :  { %v50_v7 = vsub.f32 %v39_v0, %v46_v6 }
  0xa9   :  { %v52_v8 = vmul.f32 1.442695, %v50_v7  ;;  %v80_v9 = vsel %vm43_vm0, %v50_v7, 0.0  ;;  %v72_v10 = vmul.f32 %v50_v7, %v41_v4 }
  0xaa   :  { %81 = vadd.xlane.f32.xlu0 %v80_v9  ;;  %v49_v11 = vpop.xlane.xlu0 %48 }
  0xab   :  { %113 = vpow2.f32 %v52_v8  ;;  %v51_v12 = vsub.f32 %v40_v1, %v49_v11  ;;  %v74_v14 = vsel %vm43_vm0, %v72_v10, 0.0 }
  0xad   :  { %v54_v13 = vmul.f32 1.442695, %v51_v12  ;;  %v83_v21 = vsel %vm43_vm0, %v51_v12, 0.0  ;;  %v73_v22 = vmul.f32 %v51_v12, %v42_v19 }
  0xae   :  { %75 = vadd.xlane.f32.xlu0 %v74_v14  ;;  %v68_v26 = vpop.xlane.xlu0 %67 }
  0xaf   :  { %115 = vpow2.f32 %v54_v13  ;;  %v77_v23 = vsel %vm43_vm0, %v73_v22, 0.0 }
  0xb8   :  { %v114_v15 = vpop.eup %113 }
  0xb9   :  { %v56_v16 = vsel %vm43_vm0, %v114_v15, 0.0 }
  0xba   :  { %57 = vadd.xlane.f32.xlu1 %v56_v16 }
  0xbc   :  { %v116_v17 = vpop.eup %115 }
  0xbd   :  { %v59_v18 = vsel %vm43_vm0, %v116_v17, 0.0 }
  0xbe   :  { %60 = vadd.xlane.f32.xlu1 %v59_v18 }
  0xc2   :  { %70 = vadd.xlane.f32.xlu1 %v69_v20 }
  0xc6   :  { %84 = vadd.xlane.f32.xlu1 %v83_v21 }
  0xca   :  { %78 = vadd.xlane.f32.xlu1 %v77_v23 }
 0x133   :  { %v82_v28 = vpop.xlane.xlu0 %81 }
 0x134   :  { %v90_v30 = vmul.f32 0.03125, %v82_v28 }
 0x137   :  { %v76_v36 = vpop.xlane.xlu0 %75 }
 0x143   :  { %v58_v24 = vpop.xlane.xlu1 %57 }
 0x144   :  { %117 = vlog2.f32 %v58_v24 }
 0x147   :  { %v61_v25 = vpop.xlane.xlu1 %60 }
 0x148   :  { %119 = vlog2.f32 %v61_v25 }
 0x14b   :  { %v71_v27 = vpop.xlane.xlu1 %70 }
 0x14f   :  { %v85_v32 = vpop.xlane.xlu1 %84 }
 0x150   :  { %v91_v39 = vmul.f32 0.03125, %v85_v32 }
 0x151   :  { %v118_v29 = vpop.eup %117 }
 0x152   :  { %v63_v31 = vmul.f32 0.6931472, %v118_v29 }
 0x153   :  { %v79_v44 = vpop.xlane.xlu1 %78 }
 0x154   :  { %v86_v33 = vmul.f32 %v68_v26, %v63_v31  ;;  %v92_v34 = vsub.f32 %v63_v31, %v90_v30 }
 0x155   :  { %v120_v35 = vpop.eup %119 }
 0x156   :  { %v88_v37 = vsub.f32 %v86_v33, %v76_v36  ;;  %v65_v38 = vmul.f32 0.6931472, %v120_v35  ;;  %v96_v41 = vmul.f32 0.1, %v92_v34 }
 0x158   :  { %v94_v40 = vmul.f32 0.9, %v88_v37  ;;  %v87_v42 = vmul.f32 %v71_v27, %v65_v38  ;;  %v93_v43 = vsub.f32 %v65_v38, %v91_v39 }
 0x15a   :  { %v98_v45 = vadd.f32 %v96_v41, %v94_v40  ;;  %v89_v46 = vsub.f32 %v87_v42, %v79_v44  ;;  %v97_v47 = vmul.f32 0.1, %v93_v43 }
 0x15c   :  { %v95_v48 = vmul.f32 0.9, %v89_v46  ;;  %101 = vst.msk [vmem:[%s208_s2] sm:$0xff] %vm100_vm1, %v98_v45 }
 0x15e   :  { %v99_v49 = vadd.f32 %v97_v47, %v95_v48 }
 0x160   :  { %102 = vst.msk [vmem:[%s208_s2 + $0x8] sm:$0xff] %vm100_vm1, %v99_v49 }
 0x161   :  { %107 = vsyncpa [#allocation3], 1 }
 0x162   :  { %108 = vsyncpa [#allocation5], 1 }

</bundles_post_ra>
